<compile_context>
chip_gen: v7x
topology: tpu7x:2x2x1
jax: 0.10.0
libtpu: 0.0.40
codegen_flags: <defaults>
</compile_context>

<pallas_src>
import functools

import jax
import jax.numpy as jnp
from jax.experimental import pallas as pl
from jax.experimental.pallas import tpu as pltpu


_NEG_LARGE = -1.0e30  # acts as -inf for exp(), keeps all arithmetic finite


# ---------------------------------------------------------------------------
# Kernel: one (TM, TV) tile of the masked cross-entropy, online softmax along
# the class axis (grid axis 1), partial (sum, count) emitted at the last step.
# ---------------------------------------------------------------------------
def _masked_ce_kernel(logits_ref, labels_ref, out_ref, m_sc, l_sc, p_sc, *,
                      n_rows, n_cols, block_rows, block_cols):
    i = pl.program_id(0)          # row-block index
    j = pl.program_id(1)          # class-block index (reduction axis, last)
    nj = pl.num_programs(1)

    @pl.when(j == 0)
    def _():
        m_sc[...] = jnp.full_like(m_sc, _NEG_LARGE)
        l_sc[...] = jnp.zeros_like(l_sc)
        p_sc[...] = jnp.zeros_like(p_sc)

    x = logits_ref[...]                                   # (TM, TV) native dtype
    labels = labels_ref[...]                              # (TM, 1)  int32

    # Local column index; fold the tile offset into the scalar / (TM,1) side so the
    # per-element work is one iota + two compares.
    col = jax.lax.broadcasted_iota(jnp.int32, x.shape, 1)  # (TM, TV)
    lane_limit = n_cols - j * block_cols                   # scalar
    lane_ok = col < lane_limit                              # masks pad lanes of last tile

    # Masked f32 view for the log-sum-exp (pad lanes -> -1e30 => exp underflows to 0).
    xf = jnp.where(lane_ok, x.astype(jnp.float32), _NEG_LARGE)

    m_prev = m_sc[...]
    m_new = jnp.maximum(m_prev, jnp.max(xf, axis=-1, keepdims=True))
    l_sc[...] = (l_sc[...] * jnp.exp(m_prev - m_new)
                 + jnp.sum(jnp.exp(xf - m_new), axis=-1, keepdims=True))
    m_sc[...] = m_new

    # Label gather on the native-dtype tile (exact: at most one nonzero per row;
    # ignored labels (-1) and pad lanes never match).
    local_label = labels - j * block_cols                   # (TM, 1)
    sel = jnp.where(col == local_label, x, jnp.zeros_like(x))
    p_sc[...] += jnp.sum(sel, axis=-1, keepdims=True).astype(jnp.float32)

    @pl.when(j == nj - 1)
    def _():
        # Mask rows beyond the real array (partial last row tile) and ignored labels.
        row = (jax.lax.broadcasted_iota(jnp.int32, labels.shape, 0)
               + i * block_rows)
        valid = jnp.logical_and(labels != -1, row < n_rows)
        lse = m_sc[...] + jnp.log(l_sc[...])
        per_row = jnp.where(valid, lse - p_sc[...], 0.0)
        s = jnp.sum(per_row)
        c = jnp.sum(valid.astype(jnp.float32))
        # One lane-dense (1, 8, 128) block: sum in sublane 0, count in sublane 1.
        sub = jax.lax.broadcasted_iota(jnp.int32, out_ref.shape, 1)
        out_ref[...] = jnp.where(sub == 0, s, jnp.where(sub == 1, c, 0.0))


# ---------------------------------------------------------------------------
# Tiling / VMEM heuristics (generation-aware, temporaries included).
# ---------------------------------------------------------------------------
def _vmem_capacity_bytes():
    try:
        return int(pltpu.get_tpu_info().vmem_capacity_bytes)
    except Exception:
        return 64 * 1024 * 1024  # conservative fallback (v7x-sized)


def _choose_tiles(n_rows, n_cols, itemsize, vmem_cap):
    # Sublane-pack multiple for the logits dtype (f32 -> 8, bf16 -> 16, i8/fp8 -> 32).
    pack = max(8, 32 // max(1, itemsize))

    # Class (lane) tile: multiple of 128; ~4K lanes keeps per-step DMAs large while
    # the in-kernel f32 temporaries stay small on every generation.
    if n_cols < 128:
        block_cols = n_cols                       # block equals full dim (allowed)
    else:
        block_cols = min(4096, ((n_cols + 127) // 128) * 128)

    # Row tile: budget ~1/4 of VMEM, counting both the double-buffered native-dtype
    # input block and ~4 f32-sized in-kernel temporaries per tile element.
    budget = max(vmem_cap // 4, 4 * 1024 * 1024)
    bytes_per_elem = 2 * itemsize + 16
    rows = budget // max(1, block_cols * bytes_per_elem)
    rows = max(pack, min(512, (rows // pack) * pack))
    rows = min(rows, ((n_rows + pack - 1) // pack) * pack)
    return rows, block_cols


# ---------------------------------------------------------------------------
# Wrapper: masked CE (sum, count) via the tiled Pallas kernel.
# ---------------------------------------------------------------------------
def _masked_ce_sum_count(logits, labels):
    """logits: (N, V) any float dtype (bf16 streamed natively); labels: (N,) int."""
    N, V = logits.shape
    itemsize = jnp.dtype(logits.dtype).itemsize
    vmem_cap = _vmem_capacity_bytes()
    block_rows, block_cols = _choose_tiles(N, V, itemsize, vmem_cap)
    num_row_blocks = pl.cdiv(N, block_rows)
    num_col_blocks = pl.cdiv(V, block_cols)

    # Scoped-VMEM limit: 2x the estimated peak (input double buffer + f32 temps +
    # scratch/outputs), clamped to stay well under physical VMEM on every generation.
    est = (2 * block_rows * block_cols * itemsize          # double-buffered logits tile
           + 4 * block_rows * block_cols * 4               # f32 in-kernel temporaries
           + 8 * block_rows * 4                            # labels + (m, l, p) scratch
           + 2 * 8 * 128 * 4)                              # output block
    vmem_limit = int(min(vmem_cap * 3 // 4, max(32 * 1024 * 1024, 2 * est)))

    labels2d = labels.reshape(N, 1).astype(jnp.int32)

    kernel = functools.partial(
        _masked_ce_kernel,
        n_rows=N, n_cols=V, block_rows=block_rows, block_cols=block_cols)

    cost = pl.CostEstimate(
        flops=int(8 * N * V),
        transcendentals=int(N * V),
        bytes_accessed=int(N * V * itemsize + N * 4 + num_row_blocks * 8 * 128 * 4),
    )

    partials = pl.pallas_call(
        kernel,
        out_shape=jax.ShapeDtypeStruct((num_row_blocks, 8, 128), jnp.float32),
        grid=(num_row_blocks, num_col_blocks),
        in_specs=[
            pl.BlockSpec((block_rows, block_cols), lambda i, j: (i, j)),
            pl.BlockSpec((block_rows, 1), lambda i, j: (i, 0)),
        ],
        out_specs=pl.BlockSpec((1, 8, 128), lambda i, j: (i, 0, 0)),
        scratch_shapes=[
            pltpu.VMEM((block_rows, 1), jnp.float32),   # running max m
            pltpu.VMEM((block_rows, 1), jnp.float32),   # running exp-sum l
            pltpu.VMEM((block_rows, 1), jnp.float32),   # picked logit p
        ],
        compiler_params=pltpu.CompilerParams(
            dimension_semantics=("parallel", "arbitrary"),
            vmem_limit_bytes=vmem_limit,
        ),
        cost_estimate=cost,
    )(logits, labels2d)

    return jnp.sum(partials[:, 0, 0]), jnp.sum(partials[:, 1, 0])


# ---------------------------------------------------------------------------
# Tiny 2-class NSP head: plain JAX (a Pallas call would be pure launch overhead).
# ---------------------------------------------------------------------------
def _nsp_masked_ce_mean(logits, labels):
    logits = logits.astype(jnp.float32)
    lse = jax.nn.logsumexp(logits, axis=-1)
    picked = jnp.take_along_axis(
        logits, jnp.clip(labels, 0, None)[:, None], axis=-1)[:, 0]
    valid = labels != -1
    loss = jnp.where(valid, lse - picked, 0.0)
    return jnp.sum(loss) / jnp.sum(valid.astype(jnp.float32))


# ---------------------------------------------------------------------------
# Public API: equivalent of BertPretrainingCriterion.forward.
# ---------------------------------------------------------------------------
def bert_pretraining_criterion(prediction_scores, seq_relationship_score,
                               masked_lm_labels, next_sentence_labels,
                               vocab_size):
    # Feed the MLM logits to the kernel in their native dtype (on v5e especially,
    # produce them as bf16 upstream: this loss is strictly HBM-bound there).
    mlm_logits = prediction_scores.reshape(-1, vocab_size)       # (B*S, vocab)
    mlm_labels = masked_lm_labels.reshape(-1)                     # (B*S,)
    nsp_logits = seq_relationship_score.reshape(-1, 2)            # (B, 2)
    nsp_labels = next_sentence_labels.reshape(-1)                  # (B,)

    s_mlm, c_mlm = _masked_ce_sum_count(mlm_logits, mlm_labels)

    # CrossEntropyLoss(reduction='mean', ignore_index=-1): sum / num_valid
    masked_lm_loss = s_mlm / c_mlm
    next_sentence_loss = _nsp_masked_ce_mean(nsp_logits, nsp_labels)
    return masked_lm_loss + next_sentence_loss


# ---------------------------------------------------------------------------
# Pure-JAX reference for sanity checking.
# ---------------------------------------------------------------------------
def _reference(prediction_scores, seq_relationship_score,
               masked_lm_labels, next_sentence_labels, vocab_size):
    def ce(logits, labels):
        logits = logits.astype(jnp.float32)
        lse = jax.nn.logsumexp(logits, axis=-1)
        picked = jnp.take_along_axis(
            logits, jnp.clip(labels, 0, None)[:, None], axis=-1)[:, 0]
        valid = labels != -1
        loss = jnp.where(valid, lse - picked, 0.0)
        return jnp.sum(loss) / jnp.sum(valid.astype(jnp.float32))
    return (ce(prediction_scores.reshape(-1, vocab_size),
               masked_lm_labels.reshape(-1)) +
            ce(seq_relationship_score.reshape(-1, 2),
               next_sentence_labels.reshape(-1)))


if __name__ == "__main__":
    # Small shapes consistent with the module's forward: batch=2, seq=8, vocab=32.
    B, S, VOCAB = 2, 8, 32
    key = jax.random.PRNGKey(0)
    k1, k2, k3, k4 = jax.random.split(key, 4)

    prediction_scores = jax.random.normal(k1, (B, S, VOCAB), dtype=jnp.float32)
    seq_relationship_score = jax.random.normal(k2, (B, 2), dtype=jnp.float32)

    masked_lm_labels = jax.random.randint(k3, (B, S), 0, VOCAB, dtype=jnp.int32)
    # mark a few positions as ignored (-1), as in real MLM labels
    ignore_mask = jax.random.bernoulli(k4, p=0.5, shape=(B, S))
    masked_lm_labels = jnp.where(ignore_mask, -1, masked_lm_labels)

    next_sentence_labels = jnp.array([0, 1], dtype=jnp.int32)

    total_loss = bert_pretraining_criterion(
        prediction_scores, seq_relationship_score,
        masked_lm_labels, next_sentence_labels, VOCAB)
    total_loss = jax.block_until_ready(total_loss)

    ref = _reference(prediction_scores, seq_relationship_score,
                     masked_lm_labels, next_sentence_labels, VOCAB)
    assert jnp.allclose(total_loss, ref, rtol=1e-5, atol=1e-5), (total_loss, ref)

    print("KERNEL_OK")
</pallas_src>

<mosaic_0001>
module attributes {stable_mosaic.version = 11 : i64} {
  func.func @_masked_ce_kernel(%arg0: i32, %arg1: i32, %arg2: memref<16x32xf32, #tpu.memory_space<vmem>>, %arg3: memref<16x1xi32, #tpu.memory_space<vmem>>, %arg4: memref<1x8x128xf32, #tpu.memory_space<vmem>>, %arg5: memref<16x1xf32, #tpu.memory_space<vmem>>, %arg6: memref<16x1xf32, #tpu.memory_space<vmem>>, %arg7: memref<16x1xf32, #tpu.memory_space<vmem>>) attributes {dimension_semantics = [#tpu.dimension_semantics<parallel>, #tpu.dimension_semantics<arbitrary>], iteration_bounds = array<i64: 1, 1>, scalar_prefetch = 0 : i64, scratch_operands = 3 : i64, tpu.core_type = #tpu.core_type<tc>, window_params = [{transform_indices = @transform_0, window_bounds = array<i64: 16, 32>}, {transform_indices = @transform_1, window_bounds = array<i64: 16, 1>}, {transform_indices = @transform_2, window_bounds = array<i64: 1, 8, 128>}]} {
    %c0_i32 = arith.constant 0 : i32
    %0 = arith.cmpi eq, %arg1, %c0_i32 : i32
    %1 = arith.extui %0 : i1 to i32
    %c0_i32_0 = arith.constant 0 : i32
    %2 = arith.cmpi ne, %1, %c0_i32_0 : i32
    scf.if %2 {
      %cst_24 = arith.constant -1.000000e+30 : f32
      %43 = vector.broadcast %cst_24 : f32 to vector<16x1xf32>
      %c0_25 = arith.constant 0 : index
      %c0_26 = arith.constant 0 : index
      %44 = vector.load %arg5[%c0_25, %c0_26] : memref<16x1xf32, #tpu.memory_space<vmem>>, vector<16x1xf32>
      tpu.vector_store %arg5[%c0_25, %c0_26], %43 {strides = array<i32>} : memref<16x1xf32, #tpu.memory_space<vmem>>, vector<16x1xf32>,
      %cst_27 = arith.constant 0.000000e+00 : f32
      %45 = vector.broadcast %cst_27 : f32 to vector<16x1xf32>
      %c0_28 = arith.constant 0 : index
      %c0_29 = arith.constant 0 : index
      %46 = vector.load %arg6[%c0_28, %c0_29] : memref<16x1xf32, #tpu.memory_space<vmem>>, vector<16x1xf32>
      tpu.vector_store %arg6[%c0_28, %c0_29], %45 {strides = array<i32>} : memref<16x1xf32, #tpu.memory_space<vmem>>, vector<16x1xf32>,
      %cst_30 = arith.constant 0.000000e+00 : f32
      %47 = vector.broadcast %cst_30 : f32 to vector<16x1xf32>
      %c0_31 = arith.constant 0 : index
      %c0_32 = arith.constant 0 : index
      %48 = vector.load %arg7[%c0_31, %c0_32] : memref<16x1xf32, #tpu.memory_space<vmem>>, vector<16x1xf32>
      tpu.vector_store %arg7[%c0_31, %c0_32], %47 {strides = array<i32>} : memref<16x1xf32, #tpu.memory_space<vmem>>, vector<16x1xf32>,
    } else {
    }
    %c0 = arith.constant 0 : index
    %c0_1 = arith.constant 0 : index
    %3 = vector.load %arg2[%c0, %c0_1] : memref<16x32xf32, #tpu.memory_space<vmem>>, vector<16x32xf32>
    %c0_2 = arith.constant 0 : index
    %c0_3 = arith.constant 0 : index
    %4 = vector.load %arg3[%c0_2, %c0_3] : memref<16x1xi32, #tpu.memory_space<vmem>>, vector<16x1xi32>
    %5 = tpu.iota {dimensions = array<i32: 1>} : vector<16x32xi32>
    %c32_i32 = arith.constant 32 : i32
    %6 = arith.muli %arg1, %c32_i32 : i32
    %c32_i32_4 = arith.constant 32 : i32
    %7 = arith.subi %c32_i32_4, %6 : i32
    %8 = vector.broadcast %7 : i32 to vector<16x32xi32>
    %9 = arith.cmpi slt, %5, %8 : vector<16x32xi32>
    %cst = arith.constant -1.000000e+30 : f32
    %10 = vector.broadcast %cst : f32 to vector<16x32xf32>
    %11 = arith.select %9, %3, %10 : vector<16x32xi1>, vector<16x32xf32>
    %c0_5 = arith.constant 0 : index
    %c0_6 = arith.constant 0 : index
    %12 = vector.load %arg5[%c0_5, %c0_6] : memref<16x1xf32, #tpu.memory_space<vmem>>, vector<16x1xf32>
    %cst_7 = arith.constant dense<0xFF800000> : vector<16xf32>
    %13 = vector.multi_reduction <maximumf>, %11, %cst_7 [1] : vector<16x32xf32> to vector<16xf32>
    %14 = vector.shape_cast %13 : vector<16xf32> to vector<16x1xf32>
    %15 = arith.maximumf %12, %14 : vector<16x1xf32>
    %c0_8 = arith.constant 0 : index
    %c0_9 = arith.constant 0 : index
    %16 = vector.load %arg6[%c0_8, %c0_9] : memref<16x1xf32, #tpu.memory_space<vmem>>, vector<16x1xf32>
    %17 = arith.subf %12, %15 : vector<16x1xf32>
    %18 = math.exp %17 : vector<16x1xf32>
    %19 = arith.mulf %16, %18 : vector<16x1xf32>
    %20 = vector.broadcast %15 : vector<16x1xf32> to vector<16x32xf32>
    %21 = arith.subf %11, %20 : vector<16x32xf32>
    %22 = math.exp %21 : vector<16x32xf32>
    %cst_10 = arith.constant dense<0.000000e+00> : vector<16xf32>
    %23 = vector.multi_reduction <add>, %22, %cst_10 [1] : vector<16x32xf32> to vector<16xf32>
    %24 = vector.shape_cast %23 : vector<16xf32> to vector<16x1xf32>
    %25 = arith.addf %19, %24 : vector<16x1xf32>
    %c0_11 = arith.constant 0 : index
    %c0_12 = arith.constant 0 : index
    %26 = vector.load %arg6[%c0_11, %c0_12] : memref<16x1xf32, #tpu.memory_space<vmem>>, vector<16x1xf32>
    tpu.vector_store %arg6[%c0_11, %c0_12], %25 {strides = array<i32>} : memref<16x1xf32, #tpu.memory_space<vmem>>, vector<16x1xf32>,
    %c0_13 = arith.constant 0 : index
    %c0_14 = arith.constant 0 : index
    %27 = vector.load %arg5[%c0_13, %c0_14] : memref<16x1xf32, #tpu.memory_space<vmem>>, vector<16x1xf32>
    tpu.vector_store %arg5[%c0_13, %c0_14], %15 {strides = array<i32>} : memref<16x1xf32, #tpu.memory_space<vmem>>, vector<16x1xf32>,
    %c32_i32_15 = arith.constant 32 : i32
    %28 = arith.muli %arg1, %c32_i32_15 : i32
    %29 = vector.broadcast %28 : i32 to vector<16x1xi32>
    %30 = arith.subi %4, %29 : vector<16x1xi32>
    %31 = vector.broadcast %30 : vector<16x1xi32> to vector<16x32xi32>
    %32 = arith.cmpi eq, %5, %31 : vector<16x32xi32>
    %cst_16 = arith.constant 0.000000e+00 : f32
    %33 = vector.broadcast %cst_16 : f32 to vector<16x32xf32>
    %34 = arith.select %32, %3, %33 : vector<16x32xi1>, vector<16x32xf32>
    %c0_17 = arith.constant 0 : index
    %c0_18 = arith.constant 0 : index
    %35 = vector.load %arg7[%c0_17, %c0_18] : memref<16x1xf32, #tpu.memory_space<vmem>>, vector<16x1xf32>
    %cst_19 = arith.constant dense<0.000000e+00> : vector<16xf32>
    %36 = vector.multi_reduction <add>, %34, %cst_19 [1] : vector<16x32xf32> to vector<16xf32>
    %37 = vector.shape_cast %36 : vector<16xf32> to vector<16x1xf32>
    %38 = arith.addf %35, %37 : vector<16x1xf32>
    %c0_20 = arith.constant 0 : index
    %c0_21 = arith.constant 0 : index
    %39 = vector.load %arg7[%c0_20, %c0_21] : memref<16x1xf32, #tpu.memory_space<vmem>>, vector<16x1xf32>
    tpu.vector_store %arg7[%c0_20, %c0_21], %38 {strides = array<i32>} : memref<16x1xf32, #tpu.memory_space<vmem>>, vector<16x1xf32>,
    %c0_i32_22 = arith.constant 0 : i32
    %40 = arith.cmpi eq, %arg1, %c0_i32_22 : i32
    %41 = arith.extui %40 : i1 to i32
    %c0_i32_23 = arith.constant 0 : i32
    %42 = arith.cmpi ne, %41, %c0_i32_23 : i32
    scf.if %42 {
      %43 = tpu.iota {dimensions = array<i32: 0>} : vector<16x1xi32>
      %c16_i32 = arith.constant 16 : i32
      %44 = arith.muli %arg0, %c16_i32 : i32
      %45 = vector.broadcast %44 : i32 to vector<16x1xi32>
      %46 = arith.addi %43, %45 : vector<16x1xi32>
      %c-1_i32 = arith.constant -1 : i32
      %47 = vector.broadcast %c-1_i32 : i32 to vector<16x1xi32>
      %48 = arith.cmpi ne, %4, %47 : vector<16x1xi32>
      %c16_i32_24 = arith.constant 16 : i32
      %49 = vector.broadcast %c16_i32_24 : i32 to vector<16x1xi32>
      %50 = arith.cmpi slt, %46, %49 : vector<16x1xi32>
      %51 = arith.andi %48, %50 : vector<16x1xi1>
      %c0_25 = arith.constant 0 : index
      %c0_26 = arith.constant 0 : index
      %52 = vector.load %arg5[%c0_25, %c0_26] : memref<16x1xf32, #tpu.memory_space<vmem>>, vector<16x1xf32>
      %c0_27 = arith.constant 0 : index
      %c0_28 = arith.constant 0 : index
      %53 = vector.load %arg6[%c0_27, %c0_28] : memref<16x1xf32, #tpu.memory_space<vmem>>, vector<16x1xf32>
      %54 = math.log %53 : vector<16x1xf32>
      %55 = arith.addf %52, %54 : vector<16x1xf32>
      %c0_29 = arith.constant 0 : index
      %c0_30 = arith.constant 0 : index
      %56 = vector.load %arg7[%c0_29, %c0_30] : memref<16x1xf32, #tpu.memory_space<vmem>>, vector<16x1xf32>
      %57 = arith.subf %55, %56 : vector<16x1xf32>
      %cst_31 = arith.constant 0.000000e+00 : f32
      %58 = vector.broadcast %cst_31 : f32 to vector<16x1xf32>
      %59 = arith.select %51, %57, %58 : vector<16x1xi1>, vector<16x1xf32>
      %60 = vector.shape_cast %59 : vector<16x1xf32> to vector<1x16x1xf32>
      %cst_32 = arith.constant dense<0.000000e+00> : vector<1xf32>
      %61 = vector.multi_reduction <add>, %60, %cst_32 [1, 2] : vector<1x16x1xf32> to vector<1xf32>
      %62 = vector.shape_cast %61 : vector<1xf32> to vector<1x1x1xf32>
      %63 = vector.extract %62[0, 0, 0] : f32 from vector<1x1x1xf32>
      %64 = arith.extui %51 : vector<16x1xi1> to vector<16x1xi32>
      %65 = arith.sitofp %64 : vector<16x1xi32> to vector<16x1xf32>
      %66 = vector.shape_cast %65 : vector<16x1xf32> to vector<1x16x1xf32>
      %cst_33 = arith.constant dense<0.000000e+00> : vector<1xf32>
      %67 = vector.multi_reduction <add>, %66, %cst_33 [1, 2] : vector<1x16x1xf32> to vector<1xf32>
      %68 = vector.shape_cast %67 : vector<1xf32> to vector<1x1x1xf32>
      %69 = vector.extract %68[0, 0, 0] : f32 from vector<1x1x1xf32>
      %70 = tpu.iota {dimensions = array<i32: 1>} : vector<1x8x128xi32>
      %c0_i32_34 = arith.constant 0 : i32
      %71 = vector.broadcast %c0_i32_34 : i32 to vector<1x8x128xi32>
      %72 = arith.cmpi eq, %70, %71 : vector<1x8x128xi32>
      %c1_i32 = arith.constant 1 : i32
      %73 = vector.broadcast %c1_i32 : i32 to vector<1x8x128xi32>
      %74 = arith.cmpi eq, %70, %73 : vector<1x8x128xi32>
      %cst_35 = arith.constant 0.000000e+00 : f32
      %75 = vector.broadcast %69 : f32 to vector<1x8x128xf32>
      %76 = vector.broadcast %cst_35 : f32 to vector<1x8x128xf32>
      %77 = arith.select %74, %75, %76 : vector<1x8x128xi1>, vector<1x8x128xf32>
      %78 = vector.broadcast %63 : f32 to vector<1x8x128xf32>
      %79 = arith.select %72, %78, %77 : vector<1x8x128xi1>, vector<1x8x128xf32>
      %c0_36 = arith.constant 0 : index
      %c0_37 = arith.constant 0 : index
      %c0_38 = arith.constant 0 : index
      %80 = vector.load %arg4[%c0_36, %c0_37, %c0_38] : memref<1x8x128xf32, #tpu.memory_space<vmem>>, vector<1x8x128xf32>
      tpu.vector_store %arg4[%c0_36, %c0_37, %c0_38], %79 {strides = array<i32>} : memref<1x8x128xf32, #tpu.memory_space<vmem>>, vector<1x8x128xf32>,
    } else {
    }
    return
  }
  func.func @transform_0(%arg0: i32, %arg1: i32) -> (i32, i32) {
    %c0_i32 = arith.constant 0 : i32
    return %arg0, %arg1 : i32, i32
  }
  func.func @transform_1(%arg0: i32, %arg1: i32) -> (i32, i32) {
    %c0_i32 = arith.constant 0 : i32
    %c0_i32_0 = arith.constant 0 : i32
    return %arg0, %c0_i32 : i32, i32
  }
  func.func @transform_2(%arg0: i32, %arg1: i32) -> (i32, i32, i32) {
    %c0_i32 = arith.constant 0 : i32
    %c0_i32_0 = arith.constant 0 : i32
    %c0_i32_1 = arith.constant 0 : i32
    return %arg0, %c0_i32, %c0_i32_0 : i32, i32, i32
  }
}

</mosaic_0001>

<bundles_post_ra>
// kernel: tpu_custom_call.1
= control target key start
LH: loop header
LB: loop body
LE: loop exit
PB: predicated region body
PF: predicated region fallthrough
CT: control target
= control target key end

     0   :  { %v27_v0 = vlaneseq  ;;  %s320_s0 = inlined_call_operand.vmem [shape: f32[16,32], index: 0, kind: input, shape index: {}]   ;;  %s321_s1 = inlined_call_operand.vmem [shape: s32[16,1], index: 1, kind: input, shape index: {}]   ;;  %s322_s2 = inlined_call_operand.hbm [shape: f32[1,8,128], index: 2, kind: output, shape index: {}]  }
   0x1   :  { %7 = vsyncpa [#allocation6], 0  ;;  %v23_v1 = vld [vmem:[%s320_s0] sm:$0xff]  ;;  %v24_v3 = vld [vmem:[%s320_s0 + $0x8] sm:$0xff]  ;;  %vm37_vm0 = vcmask 261120   ;;  %vm16_vm2 = vcmask 7168  }
   0x2   :  { %v28_v2 = vand.u32 127, %v27_v0  ;;  %v239_v8 = vmov -1e+30   ;;  %v240_v9 = vmov 0   ;;  %v241_v10 = vmov 0.0   ;;  %v280_v11 = vld [vmem:[%s321_s1] sm:$0xff] }
   0x3   :  { %17 = vst.msk [vmem:[#allocation2] sm:$0xff] %vm16_vm2, %v239_v8  ;;  %18 = vst.msk [vmem:[#allocation2 + $0x8] sm:$0xff] %vm16_vm2, %v239_v8  ;;  %201 = vset.pattern.permute.xlu1 %v240_v9  ;;  %202 = vset.pattern.permute.xlu0 %v240_v9  ;;  %v288_v20 = vld [vmem:[%s321_s1 + $0x8] sm:$0xff]  ;;  %vm120_vm5 = vcmp.ne.s32.totalorder %v280_v11, 4294967295  ;;  %s242_s16 = smov [#allocation5]  }
   0x4   :  { %vm32_vm1 = vcmp.lt.s32.totalorder %v28_v2, 32  ;;  %19 = vst.msk [vmem:[#allocation3] sm:$0xff] %vm16_vm2, %v241_v10  ;;  %20 = vst.msk [vmem:[#allocation3 + $0x8] sm:$0xff] %vm16_vm2, %v241_v10  ;;  %vm121_vm6 = vcmp.ne.s32.totalorder %v288_v20, 4294967295  ;;  %s183_s17 = sshll.u32 %s242_s16, 4  ;;  %s184_s17 = int_to_ptr.vmem [resolvable:$true] %s183_s17 }
   0x5   :  { %v33_v4 = vsel %vm32_vm1, %v23_v1, -1e+30  ;;  %v34_v5 = vsel %vm32_vm1, %v24_v3, -1e+30  ;;  %21 = vst.msk [vmem:[#allocation4] sm:$0xff] %vm16_vm2, %v241_v10  ;;  %22 = vst.msk [vmem:[#allocation4 + $0x8] sm:$0xff] %vm16_vm2, %v241_v10  ;;  %p220_p1 = scmp.lt.s32.totalorder %s184_s17, %s184_s17 }
   0x6   :  { %v38_v6 = vsel %vm37_vm0, %v33_v4, -inf  ;;  %v41_v7 = vsel %vm37_vm0, %v34_v5, -inf  ;;  %v192_v8 = vsel %vm121_vm6, 1.0, %v241_v10  ;;  %s215_s19 = scalar_lea.vmem %s184_s17, 128 }
   0x7   :  { %39 = vmax.xlane.f32.xlu0 %v38_v6  ;;  %p216_p0 = scmp.ne.s32.totalorder %s184_s17, %s215_s19  ;;  %p221_p2 = scmp.lt.s32.totalorder %s215_s19, %s215_s19 }
   0x9   :  { %p222_p3 = por %p221_p2, %p220_p1 }
   0xa   :  { %v35_v12 = vld [vmem:[#allocation2] sm:$0xff]  ;;  %v36_v15 = vld [vmem:[#allocation2 + $0x8] sm:$0xff] }
   0xb   :  { %42 = vmax.xlane.f32.xlu0 %v41_v7  ;;  %v46_v43 = vld [vmem:[#allocation3] sm:$0xff]  ;;  %v47_v47 = vld [vmem:[#allocation3 + $0x8] sm:$0xff]  ;;  %v191_v7 = vsel %vm120_vm5, 1.0, %v241_v10  ;;  %p223_p4 = pnand %p222_p3, %p216_p0 }
   0xc   :  { %v98_v37 = vld [vmem:[#allocation4] sm:$0xff]  ;;  %v99_v52 = vld [vmem:[#allocation4 + $0x8] sm:$0xff] }
  0x21   :  { %89 = vperm.xlu0 %202, %v280_v11   ;;  %v159_v11 = vsel %vm16_vm2, %v192_v8, 0.0 }
  0x94   :  { %v40_v13 = vpop.xlane.xlu0 %39 }
  0x95   :  { %v44_v14 = vmax.f32 %v35_v12, %v40_v13 }
  0x97   :  { %v48_v16 = vsub.f32 %v35_v12, %v44_v14  ;;  %83 = vst.msk [vmem:[#allocation2] sm:$0xff] %vm16_vm2, %v44_v14  ;;  %58 = vperm.xlu1 %201, %v44_v14   ;;  %v158_v14 = vsel %vm16_vm2, %v191_v7, 0.0 }
  0x98   :  { %v43_v17 = vpop.xlane.xlu0 %42 }
  0x99   :  { %v45_v18 = vmax.f32 %v36_v15, %v43_v17  ;;  %v50_v40 = vmul.f32 1.442695, %v48_v16  ;;  %v160_v16 = vadd.f32 %v159_v11, %v158_v14 }
  0x9b   :  { %v49_v19 = vsub.f32 %v36_v15, %v45_v18  ;;  %84 = vst.msk [vmem:[#allocation2 + $0x8] sm:$0xff] %vm16_vm2, %v45_v18  ;;  %63 = vperm.xlu1 %201, %v45_v18  }
  0x9d   :  { %v52_v41 = vmul.f32 1.442695, %v49_v19 }
  0x9e   :  { %v126_v59 = vld [vmem:[#allocation2] sm:$0xff] }
  0x9f   :  { %92 = vperm.xlu1 %201, %v288_v20  }
  0xa0   :  { %v90_v21 = vpop.permute.xlu0 %89 }
  0xa1   :  { %vm94_vm3 = vcmp.eq.s32.totalorder %v28_v2, %v90_v21 }
  0xa2   :  { %v96_v22 = vsel %vm94_vm3, %v23_v1, 0.0 }
  0xa3   :  { %v100_v23 = vsel %vm37_vm0, %v96_v22, 0.0 }
  0xa4   :  { %101 = vadd.xlane.f32.xlu0 %v100_v23 }
 0x116   :  { %v59_v24 = vpop.permute.xlu1 %58 }
 0x117   :  { %v66_v25 = vsub.f32 %v33_v4, %v59_v24 }
 0x119   :  { %v68_v26 = vmul.f32 1.442695, %v66_v25 }
 0x11a   :  { %v64_v27 = vpop.permute.xlu1 %63 }
 0x11b   :  { %203 = vpow2.f32 %v68_v26  ;;  %v67_v28 = vsub.f32 %v34_v5, %v64_v27 }
 0x11d   :  { %v70_v29 = vmul.f32 1.442695, %v67_v28 }
 0x11e   :  { %v93_v31 = vpop.permute.xlu1 %92 }
 0x11f   :  { %205 = vpow2.f32 %v70_v29  ;;  %vm95_vm4 = vcmp.eq.s32.totalorder %v28_v2, %v93_v31  ;;  %v127_v2 = vld [vmem:[#allocation2 + $0x8] sm:$0xff] }
 0x120   :  { %v97_v35 = vsel %vm95_vm4, %v24_v3, 0.0  ;;  %207 = vpow2.f32 %v50_v40 }
 0x121   :  { %v103_v36 = vsel %vm37_vm0, %v97_v35, 0.0  ;;  %209 = vpow2.f32 %v52_v41 }
 0x125   :  { %v204_v30 = vpop.eup %203 }
 0x126   :  { %v72_v32 = vsel %vm37_vm0, %v204_v30, 0.0  ;;  %v114_v30 = vshrl.u32 %v27_v0, 7 }
 0x127   :  { %73 = vadd.xlane.f32.xlu1 %v72_v32 }
 0x128   :  { %vm171_vm7 = vcmp.eq.s32.totalorder %v114_v30, 1  ;;  %vm170_vm8 = vcmp.eq.s32.totalorder %v114_v30, 0 }
 0x129   :  { %v206_v33 = vpop.eup %205 }
 0x12a   :  { %v75_v34 = vsel %vm37_vm0, %v206_v33, 0.0  ;;  %v208_v42 = vpop.eup %207 }
 0x12b   :  { %76 = vadd.xlane.f32.xlu1 %v75_v34  ;;  %v54_v44 = vmul.f32 %v208_v42, %v46_v43  ;;  %v210_v45 = vpop.eup %209 }
 0x12c   :  { %v55_v49 = vmul.f32 %v210_v45, %v47_v47 }
 0x12f   :  { %104 = vadd.xlane.f32.xlu1 %v103_v36 }
 0x131   :  { %v102_v38 = vpop.xlane.xlu0 %101 }
 0x132   :  { %v106_v39 = vadd.f32 %v102_v38, %v98_v37 }
 0x134   :  { %108 = vst.msk [vmem:[#allocation4] sm:$0xff] %vm16_vm2, %v106_v39 }
 0x13b   :  { %v136_v60 = vld [vmem:[#allocation4] sm:$0xff] }
 0x1b4   :  { %v74_v46 = vpop.xlane.xlu1 %73 }
 0x1b5   :  { %v78_v48 = vadd.f32 %v74_v46, %v54_v44 }
 0x1b7   :  { %81 = vst.msk [vmem:[#allocation3] sm:$0xff] %vm16_vm2, %v78_v48 }
 0x1b8   :  { %v77_v50 = vpop.xlane.xlu1 %76 }
 0x1b9   :  { %v79_v51 = vadd.f32 %v77_v50, %v55_v49 }
 0x1bb   :  { %82 = vst.msk [vmem:[#allocation3 + $0x8] sm:$0xff] %vm16_vm2, %v79_v51 }
 0x1bc   :  { %v105_v53 = vpop.xlane.xlu1 %104 }
 0x1bd   :  { %v107_v54 = vadd.f32 %v105_v53, %v99_v52 }
 0x1be   :  { %v128_v55 = vld [vmem:[#allocation3] sm:$0xff] }
 0x1bf   :  { %109 = vst.msk [vmem:[#allocation4 + $0x8] sm:$0xff] %vm16_vm2, %v107_v54  ;;  %211 = vlog2.f32 %v128_v55 }
 0x1c2   :  { %v129_v56 = vld [vmem:[#allocation3 + $0x8] sm:$0xff] }
 0x1c3   :  { %213 = vlog2.f32 %v129_v56 }
 0x1c6   :  { %v137_v4 = vld [vmem:[#allocation4 + $0x8] sm:$0xff] }
 0x1c9   :  { %v212_v57 = vpop.eup %211 }
 0x1ca   :  { %v131_v58 = vmul.f32 0.6931472, %v212_v57 }
 0x1cc   :  { %v134_v61 = vadd.f32 %v131_v58, %v126_v59 }
 0x1cd   :  { %v214_v62 = vpop.eup %213 }
 0x1ce   :  { %v133_v63 = vmul.f32 0.6931472, %v214_v62  ;;  %v138_v1 = vsub.f32 %v134_v61, %v136_v60 }
 0x1d0   :  { %v135_v3 = vadd.f32 %v133_v63, %v127_v2  ;;  %v140_v6 = vsel %vm120_vm5, %v138_v1, 0.0 }
 0x1d1   :  { %v142_v12 = vsel %vm16_vm2, %v140_v6, 0.0 }
 0x1d2   :  { %v139_v5 = vsub.f32 %v135_v3, %v137_v4 }
 0x1d4   :  { %v141_v9 = vsel %vm121_vm6, %v139_v5, 0.0 }
 0x1d5   :  { %v143_v13 = vsel %vm16_vm2, %v141_v9, 0.0 }
 0x1d6   :  { %v144_v15 = vadd.f32 %v143_v13, %v142_v12 }
 0x1d8   :  { %145 = vadd.xlane.f32.xlu1 %v144_v15 }
 0x1dc   :  { %161 = vadd.xlane.f32.xlu1 %v160_v16 }
 0x265   :  { %v146_v17 = vpop.xlane.xlu1 %145 }
 0x266   :  { %v147_v18 = vrot.slane %v146_v17, 4 }
 0x268   :  { %v148_v19 = vadd.f32 %v147_v18, %v146_v17 }
 0x269   :  { %v162_v20 = vpop.xlane.xlu1 %161 }
 0x26a   :  { %v149_v21 = vrot.slane %v148_v19, 2  ;;  %v163_v22 = vrot.slane %v162_v20, 4 }
 0x26c   :  { %v164_v10 = vadd.f32 %v163_v22, %v162_v20  ;;  %v150_v23 = vadd.f32 %v149_v21, %v148_v19 }
 0x26e   :  { %v165_v24 = vrot.slane %v164_v10, 2  ;;  %v151_v25 = vrot.slane %v150_v23, 1 }
 0x270   :  { %v166_v26 = vadd.f32 %v165_v24, %v164_v10  ;;  %v152_v27 = vadd.f32 %v151_v25, %v150_v23 }
 0x272   :  { %193 = vpush %v152_v27  ;;  %v167_v28 = vrot.slane %v166_v26, 1 }
 0x274   :  { %v168_v29 = vadd.f32 %v167_v28, %v166_v26 }
 0x276   :  { %195 = vpush %v168_v29 }
 0x2a3   :  { %s194_s1 = spop %193 }
 0x2a4   :  { %v174_v32 = vstv %s194_s1 }
 0x2a7   :  { %s196_s18 = spop %195 }
 0x2a8   :  { %v172_v31 = vstv %s196_s18 }
 0x2a9   :  { %v173_v33 = vsel %vm171_vm7, %v172_v31, 0.0 }
 0x2aa   :  { %v175_v34 = vsel %vm170_vm8, %v174_v32, %v173_v33 }
 0x2ab   :  { %176 = vst [vmem:[#allocation5] sm:$0xff] %v175_v34 }
 0x2ac   :  { %226 = shalt.err (!%p223_p4)
}
 0x2ad   :  { %s227_s22 = scalar_lea.hbm %s322_s2, 128 }
 0x2ae   :  { %p228_p5 = scmp.ne.s32.totalorder %s322_s2, %s227_s22  ;;  %p231_p6 = scmp.lt.u32.totalorder %s227_s22, %s322_s2 }
 0x2b0   :  { %p233_p7 = pnand %p231_p6, %p228_p5 }
 0x2b2   :  { %236 = shalt.err (!%p233_p7)
}
 0x2b3   :  { %186 = dma.vmem_to_hbm [thread:$0]  %s184_s17, 128, %s322_s2, [#allocation6]  }
 0x2b4   :  { %237 = dma.done.wait [#allocation6], 128  }
 0x2b5   :  { %238 = vsyncadd [#allocation6], 4294967168 }
 0x2b6   :  { %190 = vsyncpa [#allocation6], 1 }

</bundles_post_ra>
